<compile_context>
chip_gen: v6e
topology: v6e:2x2x1
jax: 0.10.0
libtpu: 0.0.40
codegen_flags: <defaults>
</compile_context>

<pallas_src>
import math

import jax
import jax.numpy as jnp
from jax.experimental import pallas as pl
from jax.experimental.pallas import tpu as pltpu


# --------------------------------------------------------------------------
# helpers
# --------------------------------------------------------------------------
def _round_up(x, m):
    return ((x + m - 1) // m) * m


def _padded_time(t1):
    """Pad T1 to a sublane/lane friendly length and pick a query-tile size."""
    t1p = _round_up(t1, 8)
    if t1p <= 128:
        return t1p, t1p                           # single query tile
    if t1p <= 1024:
        return _round_up(t1, 128), 128
    # long sequences: 256-row query tiles fill the 256-wide MXU on v6e/v7x
    return _round_up(t1, 256), 256


def _key_chunk(t1p):
    """Key-chunk length for the flash-style softmax (bounds the live score tensor)."""
    if t1p <= 512:
        return t1p
    for c in (512, 384, 256, 128):
        if t1p % c == 0:
            return c
    return t1p


def _vmem_cap_bytes():
    try:
        return int(getattr(pltpu.get_tpu_info(), "vmem_capacity_bytes", 64 << 20))
    except Exception:
        return 64 << 20                            # conservative (v7x per-core)


def _layer_vmem_limit_bytes(T1p, tq, C, n_heads, kc):
    H = 4 * C
    w = (4 * C * C + 2 * C * H) * 2 + (10 * C + H) * 4        # bf16 weights + f32 bias/LN
    io = 2 * (T1p * C * 2 + T1p * 4 + T1p * 4 + tq * C * 2)   # double-buffered x/mask/bias/out
    scr = 3 * T1p * C * 2                                     # LN + K + V scratch (bf16)
    inter = (n_heads * tq * kc * (4 + 2)                      # scores f32 + probs bf16
             + n_heads * tq * (C // n_heads) * 4              # ctx accumulator
             + 4 * tq * C * 4 + tq * H * (4 + 2))             # q / residual / mlp temporaries
    est = w + io + scr + 2 * inter + (8 << 20)                # headroom for Mosaic scratch
    hard_cap = int(_vmem_cap_bytes() * 0.85)                  # ~54 MiB on v7x, ~108 on v5e/v6e
    return int(min(hard_cap, max(32 << 20, est)))


def _const_spec(shape, index_map):
    """Grid-invariant (weight) block: single-buffer it if the API supports it."""
    try:
        return pl.BlockSpec(shape, index_map, pipeline_mode=pl.Buffered(1))
    except Exception:
        return pl.BlockSpec(shape, index_map)


def sinusoid_encoding(max_seq_len, n_freqs):
    # returns pe of shape (2*n_freqs, max_seq_len)  (channels, time) as in torch buffer
    pos = jnp.arange(max_seq_len, dtype=jnp.float32)
    freqs = 10000.0 ** (jnp.arange(n_freqs, dtype=jnp.float32) / n_freqs)
    ang = pos[None, :] / freqs[:, None]                       # (n_freqs, T)
    return jnp.concatenate([jnp.sin(ang), jnp.cos(ang)], axis=0)


# --------------------------------------------------------------------------
# Pallas kernel 1: fused masked 1x1 conv + PE add + bkgd-token prepend + pad
#   out[b] = concat([bkgd, ((x[b] @ W + bias) + pe) * mask[b], zeros_pad])
# --------------------------------------------------------------------------
def _make_embd_kernel(T, T1p, use_bkgd):
    off = 1 if use_bkgd else 0
    pad = T1p - T - off

    def kernel(x_ref, w_ref, b_ref, m_ref, pe_ref, bk_ref, o_ref):
        x = x_ref[0].astype(jnp.bfloat16)                       # (T, Cin)
        y = jnp.dot(x, w_ref[...], preferred_element_type=jnp.float32) + b_ref[...]
        y = (y + pe_ref[...]) * m_ref[0]                        # == conv*mask + pe*mask
        # direct sub-stores (no whole-slab concatenate / relayout)
        if use_bkgd:
            o_ref[0, 0:1, :] = bk_ref[...].astype(o_ref.dtype)  # bkgd row is NOT masked (torch)
        o_ref[0, off:off + T, :] = y.astype(o_ref.dtype)
        if pad > 0:
            o_ref[0, off + T:T1p, :] = jnp.zeros((pad, y.shape[1]), o_ref.dtype)

    return kernel


def embd_stage(x, w, b, mask_f, pe_t, bkgd, *, T1p, use_bkgd):
    # x: (B, T, Cin) f32, w: (Cin, C) bf16, b: (1, C) f32, mask_f: (B, T, 1) f32,
    # pe_t: (T, C) f32, bkgd: (1, C) f32 -> (B, T1p, C) bf16
    B, T, Cin = x.shape
    C = w.shape[1]

    def const(shape):
        return _const_spec(shape, lambda b_: (0,) * len(shape))

    return pl.pallas_call(
        _make_embd_kernel(T, T1p, use_bkgd),
        out_shape=jax.ShapeDtypeStruct((B, T1p, C), jnp.bfloat16),
        grid_spec=pltpu.PrefetchScalarGridSpec(
            num_scalar_prefetch=0,
            grid=(B,),
            in_specs=[
                pl.BlockSpec((1, T, Cin), lambda b_: (b_, 0, 0)),
                const((Cin, C)),
                const((1, C)),
                pl.BlockSpec((1, T, 1), lambda b_: (b_, 0, 0)),
                const((T, C)),
                const((1, C)),
            ],
            out_specs=pl.BlockSpec((1, T1p, C), lambda b_: (b_, 0, 0)),
        ),
        compiler_params=pltpu.CompilerParams(dimension_semantics=("parallel",)),
    )(x, w, b, mask_f, pe_t, bkgd)


# --------------------------------------------------------------------------
# Pallas kernel 2: one fused pre-LN transformer encoder layer, query-tiled
#   per batch element (q-tile 0): y = LN1(x_full); K/V = y @ Wk/Wv  -> VMEM scratch
#   per q tile:                   Q, attention (additive key bias), out-proj, MLP
# --------------------------------------------------------------------------
def _make_layer_kernel(n_heads, tq, T1p, C, key_chunk):
    Dh = C // n_heads
    scale = 1.0 / math.sqrt(Dh)
    n_kc = T1p // key_chunk

    def layer_norm(t, g, b):
        mu = jnp.mean(t, axis=-1, keepdims=True)
        var = jnp.mean((t - mu) ** 2, axis=-1, keepdims=True)
        return (t - mu) * jax.lax.rsqrt(var + 1e-5) * g + b

    def kernel(x_ref, m_ref, kb_ref,
               ln1g_ref, ln1b_ref,
               wq_ref, bq_ref, wk_ref, bk_ref, wv_ref, bv_ref, wo_ref, bo_ref,
               ln2g_ref, ln2b_ref,
               w1_ref, b1_ref, w2_ref, b2_ref,
               o_ref,
               yln_scr, k_scr, v_scr):
        qi = pl.program_id(1)

        # ---- hoisted per-batch work: LN1 of the full sequence + K/V projections ----
        @pl.when(qi == 0)
        def _():
            x_full = x_ref[0].astype(jnp.float32)                        # (T1p, C)
            y_full = layer_norm(x_full, ln1g_ref[...], ln1b_ref[...]).astype(jnp.bfloat16)
            yln_scr[...] = y_full
            k = jnp.dot(y_full, wk_ref[...], preferred_element_type=jnp.float32) + bk_ref[...]
            v = jnp.dot(y_full, wv_ref[...], preferred_element_type=jnp.float32) + bv_ref[...]
            # head-major relayout done once per batch element (not per q tile)
            k_scr[...] = jnp.transpose(
                k.astype(jnp.bfloat16).reshape(T1p, n_heads, Dh), (1, 0, 2))
            v_scr[...] = jnp.transpose(
                v.astype(jnp.bfloat16).reshape(T1p, n_heads, Dh), (1, 0, 2))

        row0 = pl.multiple_of(qi * tq, tq)
        x_q = x_ref[0, pl.ds(row0, tq), :].astype(jnp.float32)           # (tq, C)
        m_q = m_ref[0, pl.ds(row0, tq), :]                               # (tq, 1) f32

        # ---- masked multi-head self-attention (pre-LN), bf16 MXU / f32 accumulate ----
        y_q = yln_scr[pl.ds(row0, tq), :]                                # (tq, C) bf16
        q = jnp.dot(y_q, wq_ref[...], preferred_element_type=jnp.float32) + bq_ref[...]
        qh = jnp.transpose(q.astype(jnp.bfloat16).reshape(tq, n_heads, Dh), (1, 0, 2))

        if n_kc == 1:
            kbias = kb_ref[0]                                            # (1, T1p) additive
            att = jnp.einsum('hqd,hkd->hqk', qh, k_scr[...],
                             preferred_element_type=jnp.float32) * scale
            att = att + kbias[None, :, :]                                # key masking
            p = jax.nn.softmax(att, axis=-1).astype(jnp.bfloat16)
            ctx = jnp.einsum('hqk,hkd->hqd', p, v_scr[...],
                             preferred_element_type=jnp.float32)         # (nH, tq, Dh)
        else:
            # flash-style online softmax over key chunks: live scores are (nH, tq, kc)
            def body(c, carry):
                m_run, l_run, acc = carry
                c0 = pl.multiple_of(c * key_chunk, key_chunk)
                kc_ = k_scr[:, pl.ds(c0, key_chunk), :]
                vc_ = v_scr[:, pl.ds(c0, key_chunk), :]
                bc_ = kb_ref[0, :, pl.ds(c0, key_chunk)]                 # (1, kc)
                s = jnp.einsum('hqd,hkd->hqk', qh, kc_,
                               preferred_element_type=jnp.float32) * scale
                s = s + bc_[None, :, :]
                m_new = jnp.maximum(m_run, s.max(axis=-1, keepdims=True))
                a = jnp.exp(m_run - m_new)
                p_ = jnp.exp(s - m_new)
                l_new = a * l_run + p_.sum(axis=-1, keepdims=True)
                acc_new = a * acc + jnp.einsum('hqk,hkd->hqd', p_.astype(jnp.bfloat16), vc_,
                                               preferred_element_type=jnp.float32)
                return m_new, l_new, acc_new

            m0 = jnp.full((n_heads, tq, 1), -1e30, jnp.float32)
            l0 = jnp.zeros((n_heads, tq, 1), jnp.float32)
            a0 = jnp.zeros((n_heads, tq, Dh), jnp.float32)
            _, l_run, acc = jax.lax.fori_loop(0, n_kc, body, (m0, l0, a0))
            ctx = acc * pl.reciprocal(l_run, approx=True)

        ctx = jnp.transpose(ctx, (1, 0, 2)).reshape(tq, C).astype(jnp.bfloat16)
        attn_out = jnp.dot(ctx, wo_ref[...],
                           preferred_element_type=jnp.float32) + bo_ref[...]
        attn_out = attn_out * m_q
        xq = x_q * m_q + attn_out

        # ---- MLP (pre-LN, 4x expansion, tanh-approx GELU) ----
        y2 = layer_norm(xq, ln2g_ref[...], ln2b_ref[...]).astype(jnp.bfloat16)
        h1 = jnp.dot(y2, w1_ref[...], preferred_element_type=jnp.float32) + b1_ref[...]
        h1 = jax.nn.gelu(h1, approximate=True).astype(jnp.bfloat16)
        mlp_out = jnp.dot(h1, w2_ref[...], preferred_element_type=jnp.float32) + b2_ref[...]
        xq = xq + mlp_out * m_q

        o_ref[0] = xq.astype(o_ref.dtype)

    return kernel


def transformer_layer(x, mask_p, key_bias, params, n_heads, tq, key_chunk, vmem_limit):
    # x: (B, T1p, C) bf16, mask_p: (B, T1p, 1) f32, key_bias: (B, 1, T1p) f32
    B, T1p, C = x.shape
    H = 4 * C
    Dh = C // n_heads
    nq = T1p // tq

    def cmap(shape):
        return _const_spec(shape, lambda b_, q_: (0,) * len(shape))

    weight_specs = [
        cmap((1, C)), cmap((1, C)),          # ln1 gamma / beta
        cmap((C, C)), cmap((1, C)),          # wq / bq
        cmap((C, C)), cmap((1, C)),          # wk / bk
        cmap((C, C)), cmap((1, C)),          # wv / bv
        cmap((C, C)), cmap((1, C)),          # wo / bo
        cmap((1, C)), cmap((1, C)),          # ln2 gamma / beta
        cmap((C, H)), cmap((1, H)),          # mlp fc1
        cmap((H, C)), cmap((1, C)),          # mlp fc2
    ]

    return pl.pallas_call(
        _make_layer_kernel(n_heads, tq, T1p, C, key_chunk),
        out_shape=jax.ShapeDtypeStruct((B, T1p, C), jnp.bfloat16),
        grid_spec=pltpu.PrefetchScalarGridSpec(
            num_scalar_prefetch=0,
            grid=(B, nq),
            in_specs=[
                pl.BlockSpec((1, T1p, C), lambda b_, q_: (b_, 0, 0)),
                pl.BlockSpec((1, T1p, 1), lambda b_, q_: (b_, 0, 0)),
                pl.BlockSpec((1, 1, T1p), lambda b_, q_: (b_, 0, 0)),
            ] + weight_specs,
            out_specs=pl.BlockSpec((1, tq, C), lambda b_, q_: (b_, q_, 0)),
            scratch_shapes=[
                pltpu.VMEM((T1p, C), jnp.bfloat16),            # LN1(x_full)
                pltpu.VMEM((n_heads, T1p, Dh), jnp.bfloat16),  # K (head-major)
                pltpu.VMEM((n_heads, T1p, Dh), jnp.bfloat16),  # V (head-major)
            ]),
        compiler_params=pltpu.CompilerParams(
            # q axis "arbitrary": K/V scratch written at q-tile 0 is reused by later tiles.
            # batch stays "parallel" for megacore (on v7x keep >=2 batch rows per chip).
            dimension_semantics=("parallel", "arbitrary"),
            vmem_limit_bytes=vmem_limit),
    )(x, mask_p, key_bias, *params)


# --------------------------------------------------------------------------
# Parameter construction + glue (plain JAX)
# --------------------------------------------------------------------------
def init_params(key, in_dim, embd_dim, n_layers):
    C, H = embd_dim, 4 * embd_dim
    keys = jax.random.split(key, 2 + 6 * n_layers)
    std = 0.02

    def bf16_w(k, shape):
        return (jax.random.normal(k, shape, jnp.float32) * std).astype(jnp.bfloat16)

    params = {}
    # embd_fc (Conv1d kernel=1): weight (Cout, Cin, 1) in torch -> (Cin, Cout) bf16, bias zeros
    params["embd_w"] = bf16_w(keys[0], (in_dim, C))
    params["embd_b"] = jnp.zeros((1, C), jnp.float32)
    # background token (embd_dim, 1) trunc_normal(std=0.02)
    params["bkgd_token"] = (
        jax.random.truncated_normal(keys[1], -2.0, 2.0, (C, 1), jnp.float32) * std)

    layers = []
    for l in range(n_layers):
        k = keys[2 + 6 * l: 2 + 6 * (l + 1)]
        layers.append([
            jnp.ones((1, C), jnp.float32), jnp.zeros((1, C), jnp.float32),   # ln1
            bf16_w(k[0], (C, C)), jnp.zeros((1, C), jnp.float32),            # q
            bf16_w(k[1], (C, C)), jnp.zeros((1, C), jnp.float32),            # k
            bf16_w(k[2], (C, C)), jnp.zeros((1, C), jnp.float32),            # v
            bf16_w(k[3], (C, C)), jnp.zeros((1, C), jnp.float32),            # out proj
            jnp.ones((1, C), jnp.float32), jnp.zeros((1, C), jnp.float32),   # ln2
            bf16_w(k[4], (C, H)), jnp.zeros((1, H), jnp.float32),            # mlp fc1
            bf16_w(k[5], (H, C)), jnp.zeros((1, C), jnp.float32),            # mlp fc2
        ])
    params["layers"] = layers
    return params


def text_transformer_forward(params, x_nct, mask_bt, *, embd_dim, n_heads,
                             max_seq_len, use_abs_pe=True, use_bkgd_token=True):
    """x_nct: (B, in_dim, T) torch layout; mask_bt: (B, T) bool.
    Returns (x, mask) in channel-last layout: (B, T', C) f32, (B, T', 1) f32."""
    B, _, T = x_nct.shape
    C = embd_dim
    x = jnp.transpose(x_nct, (0, 2, 1)).astype(jnp.float32)        # (B, T, Cin)
    mask_f = mask_bt.astype(jnp.float32)[:, :, None]               # (B, T, 1)

    # absolute sinusoidal PE (eval path: T <= max_seq_len so no interpolation)
    if use_abs_pe:
        # TODO(synk): F.interpolate path for T > max_seq_len not implemented (eval/short-seq only).
        pe = sinusoid_encoding(max_seq_len, C // 2) / (C ** 0.5)   # (C, Tmax)
        pe_t = jnp.transpose(pe[:, :T])                            # (T, C)
    else:
        pe_t = jnp.zeros((T, C), jnp.float32)

    if use_bkgd_token:
        bkgd = jnp.transpose(params["bkgd_token"])                 # (1, C)
        T1 = T + 1
    else:
        bkgd = jnp.zeros((1, C), jnp.float32)
        T1 = T
    T1p, tq = _padded_time(T1)
    kc = _key_chunk(T1p)

    # padded mask (B, T1p, 1): bkgd row copies mask[:, :1] (torch semantics), pad rows = 0
    mrows = []
    if use_bkgd_token:
        mrows.append(mask_f[:, :1, :])
    mrows.append(mask_f)
    if T1p > T1:
        mrows.append(jnp.zeros((B, T1p - T1, 1), jnp.float32))
    mask_p = jnp.concatenate(mrows, axis=1)                        # (B, T1p, 1)
    # precomputed additive key bias: 0 for valid keys, -1e30 for masked keys
    key_bias = jnp.transpose((mask_p - 1.0) * 1e30, (0, 2, 1))     # (B, 1, T1p)

    # fused MaskedConv1D + PE + bkgd prepend + padding -> aligned (B, T1p, C) bf16 slab
    x = embd_stage(x, params["embd_w"], params["embd_b"], mask_f, pe_t, bkgd,
                   T1p=T1p, use_bkgd=use_bkgd_token)

    # stack of transformer encoder layers (fused Pallas kernel each), bf16 residual carry
    vmem_limit = _layer_vmem_limit_bytes(T1p, tq, C, n_heads, kc)
    for layer_params in params["layers"]:
        x = transformer_layer(x, mask_p, key_bias, layer_params,
                              n_heads, tq, kc, vmem_limit)

    return x[:, :T1, :].astype(jnp.float32), mask_p[:, :T1, :]


# --------------------------------------------------------------------------
if __name__ == "__main__":
    # small but lane-dense config: embd_dim = 128 keeps every block 128-wide in lanes
    B, in_dim, embd_dim, n_heads = 2, 32, 128, 4
    T, max_seq_len, n_layers = 8, 16, 2

    key = jax.random.PRNGKey(0)
    k_param, k_x = jax.random.split(key)
    params = init_params(k_param, in_dim, embd_dim, n_layers)

    x = jax.random.normal(k_x, (B, in_dim, T), jnp.float32)        # torch NCT layout
    lengths = jnp.array([8, 5], dtype=jnp.int32)
    mask = jnp.arange(T)[None, :] < lengths[:, None]               # (B, T) bool

    out_x, out_mask = text_transformer_forward(
        params, x, mask,
        embd_dim=embd_dim, n_heads=n_heads, max_seq_len=max_seq_len)
    out_x = jax.block_until_ready(out_x)
    out_mask = jax.block_until_ready(out_mask)

    assert out_x.shape == (B, T + 1, embd_dim)
    assert out_mask.shape == (B, T + 1, 1)
    assert bool(jnp.all(jnp.isfinite(out_x)))
    print("KERNEL_OK")
</pallas_src>

<mosaic_0001>
module attributes {stable_mosaic.version = 11 : i64} {
  func.func @kernel(%arg0: i32, %arg1: memref<1x8x32xf32, #tpu.memory_space<vmem>>, %arg2: memref<32x128xbf16, #tpu.memory_space<vmem>>, %arg3: memref<1x128xf32, #tpu.memory_space<vmem>>, %arg4: memref<1x8x1xf32, #tpu.memory_space<vmem>>, %arg5: memref<8x128xf32, #tpu.memory_space<vmem>>, %arg6: memref<1x128xf32, #tpu.memory_space<vmem>>, %arg7: memref<1x16x128xbf16, #tpu.memory_space<vmem>>) attributes {dimension_semantics = [#tpu.dimension_semantics<parallel>], iteration_bounds = array<i64: 2>, scalar_prefetch = 0 : i64, scratch_operands = 0 : i64, tpu.core_type = #tpu.core_type<tc>, window_params = [{transform_indices = @transform_0, window_bounds = array<i64: 1, 8, 32>}, {pipeline_mode = #tpu.pipeline_mode<synchronous>, transform_indices = @transform_1, window_bounds = array<i64: 32, 128>}, {pipeline_mode = #tpu.pipeline_mode<synchronous>, transform_indices = @transform_2, window_bounds = array<i64: 1, 128>}, {transform_indices = @transform_3, window_bounds = array<i64: 1, 8, 1>}, {pipeline_mode = #tpu.pipeline_mode<synchronous>, transform_indices = @transform_4, window_bounds = array<i64: 8, 128>}, {pipeline_mode = #tpu.pipeline_mode<synchronous>, transform_indices = @transform_5, window_bounds = array<i64: 1, 128>}, {transform_indices = @transform_6, window_bounds = array<i64: 1, 16, 128>}]} {
    %c0 = arith.constant 0 : index
    %c0_0 = arith.constant 0 : index
    %c0_1 = arith.constant 0 : index
    %0 = vector.load %arg1[%c0, %c0_0, %c0_1] : memref<1x8x32xf32, #tpu.memory_space<vmem>>, vector<1x8x32xf32>
    %1 = vector.shape_cast %0 : vector<1x8x32xf32> to vector<8x32xf32>
    %2 = arith.truncf %1 : vector<8x32xf32> to vector<8x32xbf16>
    %c0_2 = arith.constant 0 : index
    %c0_3 = arith.constant 0 : index
    %3 = vector.load %arg2[%c0_2, %c0_3] : memref<32x128xbf16, #tpu.memory_space<vmem>>, vector<32x128xbf16>
    %cst = arith.constant dense<0.000000e+00> : vector<8x128xf32>
    %4 = tpu.matmul %2, %3, %cst {dimension_numbers = #tpu.dot_dimension_numbers<[1], [0], [0], [1], [0, 0, 1, 1], [], []>} : vector<8x32xbf16>, vector<32x128xbf16>, vector<8x128xf32> -> vector<8x128xf32>
    %c0_4 = arith.constant 0 : index
    %c0_5 = arith.constant 0 : index
    %5 = vector.load %arg3[%c0_4, %c0_5] : memref<1x128xf32, #tpu.memory_space<vmem>>, vector<1x128xf32>
    %6 = vector.broadcast %5 : vector<1x128xf32> to vector<8x128xf32>
    %7 = arith.addf %4, %6 : vector<8x128xf32>
    %c0_6 = arith.constant 0 : index
    %c0_7 = arith.constant 0 : index
    %8 = vector.load %arg5[%c0_6, %c0_7] : memref<8x128xf32, #tpu.memory_space<vmem>>, vector<8x128xf32>
    %9 = arith.addf %7, %8 : vector<8x128xf32>
    %c0_8 = arith.constant 0 : index
    %c0_9 = arith.constant 0 : index
    %c0_10 = arith.constant 0 : index
    %10 = vector.load %arg4[%c0_8, %c0_9, %c0_10] : memref<1x8x1xf32, #tpu.memory_space<vmem>>, vector<1x8x1xf32>
    %11 = vector.shape_cast %10 : vector<1x8x1xf32> to vector<8x1xf32>
    %12 = vector.broadcast %11 : vector<8x1xf32> to vector<8x128xf32>
    %13 = arith.mulf %9, %12 : vector<8x128xf32>
    %c0_11 = arith.constant 0 : index
    %c0_12 = arith.constant 0 : index
    %14 = vector.load %arg6[%c0_11, %c0_12] : memref<1x128xf32, #tpu.memory_space<vmem>>, vector<1x128xf32>
    %15 = arith.truncf %14 : vector<1x128xf32> to vector<1x128xbf16>
    %c0_13 = arith.constant 0 : index
    %c0_14 = arith.constant 0 : index
    %c0_15 = arith.constant 0 : index
    %16 = vector.load %arg7[%c0_13, %c0_14, %c0_15] : memref<1x16x128xbf16, #tpu.memory_space<vmem>>, vector<1x1x128xbf16>
    %17 = vector.shape_cast %16 : vector<1x1x128xbf16> to vector<1x128xbf16>
    %18 = vector.shape_cast %15 : vector<1x128xbf16> to vector<1x1x128xbf16>
    tpu.vector_store %arg7[%c0_13, %c0_14, %c0_15], %18 {strides = array<i32>} : memref<1x16x128xbf16, #tpu.memory_space<vmem>>, vector<1x1x128xbf16>,
    %19 = arith.truncf %13 : vector<8x128xf32> to vector<8x128xbf16>
    %c0_16 = arith.constant 0 : index
    %c1 = arith.constant 1 : index
    %c0_17 = arith.constant 0 : index
    %20 = vector.load %arg7[%c0_16, %c1, %c0_17] : memref<1x16x128xbf16, #tpu.memory_space<vmem>>, vector<1x8x128xbf16>
    %21 = vector.shape_cast %20 : vector<1x8x128xbf16> to vector<8x128xbf16>
    %22 = vector.shape_cast %19 : vector<8x128xbf16> to vector<1x8x128xbf16>
    tpu.vector_store %arg7[%c0_16, %c1, %c0_17], %22 {strides = array<i32>} : memref<1x16x128xbf16, #tpu.memory_space<vmem>>, vector<1x8x128xbf16>,
    %cst_18 = arith.constant 0.000000e+00 : bf16
    %23 = vector.broadcast %cst_18 : bf16 to vector<7x128xbf16>
    %c0_19 = arith.constant 0 : index
    %c9 = arith.constant 9 : index
    %c0_20 = arith.constant 0 : index
    %24 = vector.load %arg7[%c0_19, %c9, %c0_20] : memref<1x16x128xbf16, #tpu.memory_space<vmem>>, vector<1x7x128xbf16>
    %25 = vector.shape_cast %24 : vector<1x7x128xbf16> to vector<7x128xbf16>
    %26 = vector.shape_cast %23 : vector<7x128xbf16> to vector<1x7x128xbf16>
    tpu.vector_store %arg7[%c0_19, %c9, %c0_20], %26 {strides = array<i32>} : memref<1x16x128xbf16, #tpu.memory_space<vmem>>, vector<1x7x128xbf16>,
    return
  }
  func.func @transform_0(%arg0: i32) -> (i32, i32, i32) {
    %c0_i32 = arith.constant 0 : i32
    %c0_i32_0 = arith.constant 0 : i32
    %c0_i32_1 = arith.constant 0 : i32
    return %arg0, %c0_i32, %c0_i32_0 : i32, i32, i32
  }
  func.func @transform_1(%arg0: i32) -> (i32, i32) {
    %c0_i32 = arith.constant 0 : i32
    %c0_i32_0 = arith.constant 0 : i32
    %c0_i32_1 = arith.constant 0 : i32
    return %c0_i32, %c0_i32_0 : i32, i32
  }
  func.func @transform_2(%arg0: i32) -> (i32, i32) {
    %c0_i32 = arith.constant 0 : i32
    %c0_i32_0 = arith.constant 0 : i32
    %c0_i32_1 = arith.constant 0 : i32
    return %c0_i32, %c0_i32_0 : i32, i32
  }
  func.func @transform_3(%arg0: i32) -> (i32, i32, i32) {
    %c0_i32 = arith.constant 0 : i32
    %c0_i32_0 = arith.constant 0 : i32
    %c0_i32_1 = arith.constant 0 : i32
    return %arg0, %c0_i32, %c0_i32_0 : i32, i32, i32
  }
  func.func @transform_4(%arg0: i32) -> (i32, i32) {
    %c0_i32 = arith.constant 0 : i32
    %c0_i32_0 = arith.constant 0 : i32
    %c0_i32_1 = arith.constant 0 : i32
    return %c0_i32, %c0_i32_0 : i32, i32
  }
  func.func @transform_5(%arg0: i32) -> (i32, i32) {
    %c0_i32 = arith.constant 0 : i32
    %c0_i32_0 = arith.constant 0 : i32
    %c0_i32_1 = arith.constant 0 : i32
    return %c0_i32, %c0_i32_0 : i32, i32
  }
  func.func @transform_6(%arg0: i32) -> (i32, i32, i32) {
    %c0_i32 = arith.constant 0 : i32
    %c0_i32_0 = arith.constant 0 : i32
    %c0_i32_1 = arith.constant 0 : i32
    return %arg0, %c0_i32, %c0_i32_0 : i32, i32, i32
  }
}

</mosaic_0001>

<bundles_post_ra>
// kernel: tpu_custom_call.1
= control target key start
LH: loop header
LB: loop body
LE: loop exit
PB: predicated region body
PF: predicated region fallthrough
CT: control target
= control target key end

     0   :  { %11 = vsyncpa [#allocation3], 0  ;;  %s875_s0 = inlined_call_operand.vmem [shape: f32[2,8,32], index: 0, kind: input, shape index: {}]   ;;  %s876_s1 = inlined_call_operand.hbm [shape: bf16[32,128], index: 1, kind: input, shape index: {}]   ;;  %s877_s2 = inlined_call_operand.vmem [shape: f32[1,128], index: 2, kind: input, shape index: {}]   ;;  %s878_s3 = inlined_call_operand.vmem [shape: f32[2,8,1], index: 3, kind: input, shape index: {}]   ;;  %s879_s4 = inlined_call_operand.vmem [shape: f32[8,128], index: 4, kind: input, shape index: {}]   ;;  %s880_s5 = inlined_call_operand.vmem [shape: f32[1,128], index: 5, kind: input, shape index: {}]   ;;  %s881_s6 = inlined_call_operand.hbm [shape: bf16[2,16,128], index: 6, kind: output, shape index: {}]  }
   0x1   :  { %12 = vsyncpa [#allocation4], 0 }
   0x2   :  { %14 = vsyncpa [#allocation4 + $0x1], 0  ;;  %s720_s21 = smov 0   ;;  %s722_s22 = smov 0  }
   0x3   :  { %s724_s23 = smov 0   ;;  %s726_s24 = smov 0  }
   0x4 LB: > { %s741_s25 = sadd.s32 4294967295, %s674_s24   ;;  %s492_s26 = sadd.s32 4294967294, %s674_s24   ;;  %s674_s24 = sphi %s726_s24, %s891_s24   ;;  %s670_s23 = sphi %s724_s23, %s890_s23   ;;  %s666_s22 = sphi %s722_s22, %s889_s22   ;;  %s662_s21 = sphi %s720_s21, %s888_s21  }
   0x5   : > { %s745_s27 = sadd.s32 1, %s674_s24   ;;  %s163_s28 = sadd.s32 1, %s670_s23 }
   0x6   : > { %s160_s29 = ssub.s32 %s674_s24, %s745_s27  ;;  %p173_p0 = scmp.ne.s32.totalorder %s670_s23, %s666_s22 }
   0x7   : > { %p161_p1 = scmp.eq.s32.totalorder %s160_s29, 0  ;;  %p174_p2 = scmp.eq.s32.totalorder %s741_s25, 1 }
   0x8   : > { %p179_p3 = scmp.ne.s32.totalorder %s666_s22, %s662_s21  ;;  %p180_p4 = scmp.eq.s32.totalorder %s492_s26, 1 }
   0x9   : > { %s756_s30 = scalar_select %p161_p1, %s670_s23, %s163_s28  }
   0xa   : > { %p758_p5 = por %p174_p2, %p173_p0  ;;  %p762_p6 = por %p180_p4, %p179_p3 }
   0xb   : > { %p493_p7 = scmp.ge.s32.totalorder %s674_s24, 1  ;;  %p187_p8 = scmp.lt.s32.totalorder %s674_s24, 3 }
   0xc   : > { %s883_s8 = scalar_select %p762_p6, 1, 0 }
   0xd   : > { %p538_p9 = scmp.eq.s32.totalorder %s741_s25, 0  ;;  %p769_p10 = pnand %p493_p7, %p187_p8 }
   0xe   : > { %s676_s10 = smov [#allocation2]  }
   0xf   : > { %s199_s11 = sshll.u32 %s676_s10, 4  ;;  %p530_p11 = pneg %p769_p10  ;;  %s200_s11 = int_to_ptr.vmem [resolvable:$true] %s199_s11 }
  0x10   : > { %s595_s12 = scalar_lea.vmem %s200_s11, 256  ;;  %p603_p3 = scmp.lt.s32.totalorder %s200_s11, %s200_s11 }
  0x11   : > { %p531_p12 = pnand %p538_p9, %p530_p11  ;;  %p596_p0 = scmp.ne.s32.totalorder %s200_s11, %s595_s12 }
  0x12   : > { %p604_p4 = scmp.lt.s32.totalorder %s595_s12, %s595_s12 }
  0x13   : > { %p586_p13 = pneg %p531_p12 }
  0x14   : > { %p605_p6 = por %p604_p4, %p603_p3 }
  0x15   : > { %p598_p1 = pnand %p596_p0, %p586_p13 }
  0x17   : > { %p599_p2 = pneg %p598_p1 }
  0x19   : > { %p606_p7 = pnand %p605_p6, %p599_p2 }
  0x1b   : > { %609 = shalt.err (!%p606_p7)
}
  0x1c   : > { %s677_s13 = smov 64   ;;  %s678_s14 = smov 4  }
  0x1d   : > { %533 = dma.hbm_to_vmem [thread:$0]  (!%p531_p12), %s876_s1, 256, %s200_s11, [#allocation3], %s677_s13, %s677_s13, %s678_s14  }
  0x1e   : > { %238 = sbr.rel (%p769_p10) target bundleno = 276 (0x114), region = 44 }
  0x23   : > { %653 = dma.done.wait (%p538_p9), [#allocation3], 256  }
  0x24   : > { %655 = vsyncadd (%p538_p9), [#allocation3], 4294967040  ;;  %p271_p8 = scmp.lt.s32.totalorder %s741_s25, 1  ;;  %v679_v0 = vmov 0.0   ;;  %vm680_vm0 = vmmov 0   ;;  %v681_v1 = vmov 0  }
  0x25   : > { %516 = vmatprep.subr.bf16.mxu0 %v679_v0  ;;  %520 = vmatprep.mubr.msk.bf16.mxu0 %vm680_vm0, %v679_v0  ;;  %v582_v2 = vld [vmem:[#allocation2 + $0x8] sm:$0xff]   ;;  %v583_v3 = vld [vmem:[#allocation2] sm:$0xff]   ;;  %vm305_vm1 = vcmask 261120   ;;  %s268_s10 = sand.u32 1, %s666_s22   ;;  %vm360_vm2 = vcmask 1040384   ;;  %vm380_vm5 = vcmask 1043456  }
  0x26   : > { %s272_s17 = scalar_select %p271_p8, %s741_s25, 1  ;;  %581 = vset.pattern.permute.xlu0 %v681_v1  ;;  %517 = vmatpush3.bf16.msra.mxu0 %v582_v2  ;;  %v358_v7 = vld [vmem:[%s880_s5] sm:$0x1]  ;;  %vm361_vm3 = vsmask.f32 256 }
  0x27   : > { %518 = vmatprep.subr.bf16.mxu0 %v679_v0  ;;  %s498_s13 = sshll.u32 %s268_s10, 3  ;;  %v359_v8 = vpack.c.bf16 %v358_v7, %v358_v7  ;;  %vm800_vm4 = vmand %vm360_vm2, %vm361_vm3  ;;  %v501_v12 = vld [vmem:[%s877_s2] ss:$0 sm:$0xff]  ;;  %vm381_vm6 = vsmask.f32 7938  ;;  %s512_s19 = sshll.u32 %s741_s25, 7 }
  0x28   : > { %s499_s18 = sshll.u32 %s272_s17, 3  ;;  %s804_s14 = scalar_lea.vmem [#allocation5], %s498_s13  ;;  %v349_v14 = vld [vmem:[%s879_s4] sm:$0xff]  ;;  %vm382_vm7 = vmand %vm380_vm5, %vm381_vm6 }
  0x29   : > { %s274_s26 = scalar_lea.vmem %s875_s0, %s499_s18  ;;  %s278_s9 = scalar_lea.vmem %s878_s3, %s499_s18  ;;  %v363_v10 = vld [vmem:[%s804_s14] sm:$0x1]  ;;  %v386_v27 = vld [vmem:[%s804_s14 + $0x4] sm:$0x1] }
  0x2a   : > { %v280_v4 = vld [vmem:[%s274_s26] sm:$0xff]  ;;  %519 = vmatpush3.bf16.msra.mxu0 %v583_v3  ;;  %v364_v11 = vsel %vm800_vm4, %v359_v8, %v363_v10  ;;  %s406_s20 = sshll.u32 %s804_s14, 4  ;;  %s827_s29 = scalar_lea.hbm %s881_s6, %s512_s19  ;;  %s829_s20 = int_to_ptr.vmem [resolvable:$true] %s406_s20 }
  0x2b   : > { %v351_v5 = vld [vmem:[%s278_s9] sm:$0xff]  ;;  %v281_v6 = vpack.c.bf16 %v280_v4, %v280_v4  ;;  %365 = vst [vmem:[%s804_s14] sm:$0x1] %v364_v11  ;;  %s835_s9 = scalar_lea.sflag [#allocation4], %s268_s10  ;;  %s610_s11 = scalar_lea.vmem %s829_s20, 128 }
  0x2c   : > { %354 = vperm.xlu0 %581, %v351_v5   ;;  %p611_p6 = scmp.ne.s32.totalorder %s829_s20, %s610_s11  ;;  %s682_s25 = smov [#allocation5]  }
  0x2d   : > { %521 = vmatmul.mubr.msk.bf16.vlgmr.msra.gmra.mxu0 %vm305_vm1, %v281_v6  ;;  %s614_s12 = sshll.u32 %s682_s25, 4  ;;  %s615_s12 = int_to_ptr.vmem [resolvable:$false] %s614_s12 }
  0x2e   : > { %p612_p9 = pnand %p611_p6, %p758_p5  ;;  %s616_s13 = scalar_lea.vmem %s615_s12, 256 }
  0x2f   : > { %p617_p11 = scmp.lt.s32.totalorder %s829_s20, %s615_s12  ;;  %p618_p12 = scmp.lt.s32.totalorder %s616_s13, %s610_s11 }
  0x30   : > { %p613_p10 = pneg %p612_p9 }
  0x31   : > { %p619_p13 = por %p618_p12, %p617_p11 }
  0x32   : > { %v383_v26 = vld [vmem:[%s804_s14] sm:$0xf] }
  0x33   : > { %p620_p0 = pnand %p619_p13, %p613_p10 }
  0xa7   : > { %v355_v17 = vpop.permute.xlu0 %354 }
  0xed   : > { %v343_v13 = vpop.f32.mrf.mxu0 }
  0xee   : > { %v344_v15 = vadd.f32 %v501_v12, %v343_v13 }
  0xef   : > { %v522_v16 = vpop.f32.mrf.mxu0 }
  0xf0   : > { %v350_v18 = vadd.f32 %v349_v14, %v344_v15 }
  0xf1   : > { %v346_v19 = vpop.f32.mrf.mxu0 }
  0xf2   : > { %v357_v20 = vmul.f32 %v355_v17, %v350_v18 }
  0xf3   : > { %v523_v21 = vpop.f32.mrf.mxu0 }
  0xf4   : > { %v511_v22 = vpack.c.bf16 %v357_v20, %v357_v20 }
  0xf6   : > { %v371_v23 = vshrl.u32 %v511_v22, 16  ;;  %v374_v25 = vshll.u32 %v511_v22, 16 }
  0xf8   : > { %v373_v24 = vrot.slane %v371_v23, 7 }
  0xfa   : > { %v376_v28 = vor.u32 %v374_v25, %v373_v24  ;;  %v377_v29 = vrot.slane %v373_v24, 4 }
  0xfc   : > { %v384_v30 = vsel %vm382_vm7, %v376_v28, %v383_v26  ;;  %v387_v31 = vsel %vm800_vm4, %v377_v29, %v386_v27 }
  0xfd   : > { %388 = vst [vmem:[%s804_s14 + $0x4] sm:$0x1] %v387_v31  ;;  %385 = vst [vmem:[%s804_s14] sm:$0xf] %v384_v30 }
 0x104   : > { %v389_v32 = vld [vmem:[%s804_s14 + $0x4] sm:$0xf] }
 0x105   : > { %v390_v33 = vsel %vm382_vm7, 0, %v389_v32 }
 0x106   : > { %391 = vst [vmem:[%s804_s14 + $0x4] sm:$0xf] %v390_v33 }
 0x107   : > { %623 = shalt.err (!%p620_p0)
}
 0x108   : > { %s624_s10 = scalar_lea.hbm %s827_s29, 128  ;;  %s628_s16 = scalar_lea.hbm %s881_s6, 256 }
 0x109   : > { %p625_p1 = scmp.ne.s32.totalorder %s827_s29, %s624_s10  ;;  %p629_p4 = scmp.lt.s32.totalorder %s827_s29, %s881_s6 }
 0x10a   : > { %p630_p7 = scmp.lt.s32.totalorder %s628_s16, %s624_s10 }
 0x10b   : > { %p626_p2 = pnand %p625_p1, %p758_p5 }
 0x10c   : > { %p631_p8 = por %p630_p7, %p629_p4 }
 0x10d   : > { %p627_p3 = pneg %p626_p2 }
 0x10f   : > { %p632_p6 = pnand %p631_p8, %p627_p3 }
 0x111   : > { %635 = shalt.err (!%p632_p6)
}
 0x112   : > { %s683_s19 = smov 64   ;;  %s684_s26 = smov 4  }
 0x113   : > { %528 = dma.vmem_to_hbm [thread:$0]  (%p758_p5), %s829_s20, 128, %s827_s29, %s835_s9, %s683_s19, %s683_s19, %s684_s26  }
 0x114 PF: > { %p540_p9 = scmp.ge.s32.totalorder %s674_s24, 2  ;;  %s421_s28 = sand.u32 1, %s662_s21  }
 0x115   : > { %p887_p10 = scmp.ne.s32.totalorder %s883_s8, 0  ;;  %s422_s11 = scalar_lea.sflag [#allocation4], %s421_s28 }
 0x117   : > { %p535_p11 = pnand %p540_p9, %p887_p10 }
 0x119   : > { %p536_p12 = pneg %p535_p11 }
 0x11b   : > { %657 = dma.done.wait (%p536_p12), %s422_s11, 128  }
 0x11c   : > { %659 = vsyncadd (%p536_p12), %s422_s11, 4294967168  ;;  %p17_p13 = scmp.ge.s32.totalorder %s745_s27, 4   ;;  %s888_s21 = smov %s666_s22 }
 0x11d   : > { %s889_s22 = smov %s670_s23  ;;  %s890_s23 = smov %s756_s30 }
 0x11e   : > { %s891_s24 = smov %s745_s27  ;;  %19 = sbr.rel (!%p17_p13) target bundleno = 4 (0x4), region = 87 }
 0x123   :  { %427 = vsyncpa [#allocation3], 1 }
 0x124   :  { %429 = vsyncpa [#allocation3 + $0x1], 1 }
 0x125   :  { %430 = vsyncpa [#allocation4], 1 }
 0x126   :  { %432 = vsyncpa [#allocation4 + $0x1], 1 }

</bundles_post_ra>
